<compile_context>
chip_gen: v5e
topology: v5e:2x2
jax: 0.10.0
libtpu: 0.0.40
codegen_flags: <defaults>
</compile_context>

<pallas_src>
import functools

import jax
import jax.numpy as jnp
import numpy as np
from jax.experimental import pallas as pl
from jax.experimental.pallas import tpu as pltpu


def _cdiv(a, b):
    return (a + b - 1) // b


def _round_up(x, m):
    return _cdiv(x, m) * m


def _prelu_ln_kernel(alpha_ref, gamma_ref, beta_ref, x_ref, o_ref,
                     *, H, E, eps, inv_e):
    # alpha_ref/gamma_ref/beta_ref : (C, 1) f32 VMEM, resident across all steps
    # x_ref / o_ref                : (C, TILE_N) lane-dense block of one batch
    for h in range(H):                                  # H is small, static unroll
        r0, r1 = h * E, (h + 1) * E
        xh = x_ref[r0:r1, :].astype(jnp.float32)        # (E, TILE_N)
        ah = alpha_ref[r0:r1, :]                        # (E, 1), same slope per head
        yh = jnp.where(xh >= 0, xh, ah * xh)            # PReLU

        # Two-pass biased statistics over E (axis 0): robust (no cancellation).
        mu = jnp.sum(yh, axis=0, keepdims=True) * inv_e            # (1, TILE_N)
        d = yh - mu
        var = jnp.sum(d * d, axis=0, keepdims=True) * inv_e        # (1, TILE_N)
        inv = jax.lax.rsqrt(var + eps)                             # exact rsqrt

        g = gamma_ref[r0:r1, :]                          # (E, 1) -> lane broadcast
        b = beta_ref[r0:r1, :]
        o_ref[r0:r1, :] = (d * inv * g + b).astype(o_ref.dtype)


def all_head_prelu_layernorm_4dc(x, gamma, beta, alpha, H, E, eps=1e-5,
                                 block_bytes=4 * 1024 * 1024,
                                 vmem_limit_bytes=48 * 1024 * 1024):
    """x: [B, C, T, F] with C == H*E; gamma/beta: [1,H,E,1,1]; alpha: [H].

    Returns [B, H, E, T, F] (same as the PyTorch module's output view)."""
    B, C, T, F = x.shape
    assert C == H * E, (C, H, E)
    N = T * F

    # Lane tile from a VMEM byte budget on the x block (multiple of 128 lanes).
    itemsize = jnp.dtype(x.dtype).itemsize
    lanes_budget = max(128, block_bytes // (C * itemsize))
    tile_from_budget = max(128, (lanes_budget // 128) * 128)

    if N <= tile_from_budget:
        TILE_N = N                      # whole flattened T*F axis in one block
    else:
        TILE_N = tile_from_budget
    n_steps = _cdiv(N, TILE_N)

    # v7x megacore: keep >= 2 parallel grid iterations when feasible.
    if B == 1 and n_steps == 1 and N > 256:
        TILE_N = _round_up(_cdiv(N, 2), 128)
        n_steps = _cdiv(N, TILE_N)

    # Glue (plain JAX, all free reshapes -- no padding, no extra HBM copies).
    x3 = x.reshape(B, C, N)
    alpha_rows = jnp.repeat(alpha.reshape(H).astype(jnp.float32), E).reshape(C, 1)
    gamma_rows = gamma.reshape(C, 1).astype(jnp.float32)
    beta_rows = beta.reshape(C, 1).astype(jnp.float32)

    kernel = functools.partial(_prelu_ln_kernel, H=H, E=E,
                               eps=float(eps), inv_e=1.0 / E)

    out = pl.pallas_call(
        kernel,
        out_shape=jax.ShapeDtypeStruct((B, C, N), x.dtype),
        grid=(B, n_steps),
        in_specs=[
            pl.BlockSpec((C, 1), lambda b, n: (0, 0)),                 # alpha rows
            pl.BlockSpec((C, 1), lambda b, n: (0, 0)),                 # gamma
            pl.BlockSpec((C, 1), lambda b, n: (0, 0)),                 # beta
            pl.BlockSpec((None, C, TILE_N), lambda b, n: (b, 0, n)),   # x block
        ],
        out_specs=pl.BlockSpec((None, C, TILE_N), lambda b, n: (b, 0, n)),
        compiler_params=pltpu.CompilerParams(
            dimension_semantics=("parallel", "parallel"),
            vmem_limit_bytes=int(vmem_limit_bytes)),
    )(alpha_rows, gamma_rows, beta_rows, x3)

    return out.reshape(B, H, E, T, F)


def _reference(x, gamma, beta, alpha, H, E, eps):
    """Pure-JAX mirror of the PyTorch forward."""
    B, C, T, F = x.shape
    x5 = x.reshape(B, H, E, T, F)
    a = alpha.reshape(1, H, 1, 1, 1)
    y = jnp.where(x5 >= 0, x5, a * x5)
    mu = y.mean(axis=2, keepdims=True)
    var = ((y - mu) ** 2).mean(axis=2, keepdims=True)
    return (y - mu) / jnp.sqrt(var + eps) * gamma + beta


if __name__ == "__main__":
    key = jax.random.PRNGKey(0)
    eps = 1e-5

    B, H, E, T, Ff = 2, 2, 4, 16, 16
    C = H * E
    k1, k2 = jax.random.split(key)

    # Deterministic params (module defaults gamma=1, beta=0, alpha=0.25, with a
    # small perturbation so gamma/beta are actually exercised).
    gamma = (jnp.ones((1, H, E, 1, 1), jnp.float32)
             + 0.01 * jnp.arange(C, dtype=jnp.float32).reshape(1, H, E, 1, 1))
    beta = 0.001 * jnp.arange(C, dtype=jnp.float32).reshape(1, H, E, 1, 1)
    alpha = jnp.full((H,), 0.25, jnp.float32)

    # --- Test 1: whole T*F axis fits in one lane-dense block. ---
    x = jax.random.normal(k1, (B, C, T, Ff), dtype=jnp.float32)
    out = all_head_prelu_layernorm_4dc(x, gamma, beta, alpha, H, E, eps=eps)
    out = jax.block_until_ready(out)
    ref = _reference(x, gamma, beta, alpha, H, E, eps)
    assert out.shape == (B, H, E, T, Ff)
    np.testing.assert_allclose(np.asarray(out), np.asarray(ref),
                               atol=1e-5, rtol=1e-5)

    # --- Test 2: ragged T*F (N = 340, not a multiple of 128) with a tiny tile
    # budget to force a multi-step N grid + masked last block. ---
    T2, F2 = 17, 20
    x2 = jax.random.normal(k2, (B, C, T2, F2), dtype=jnp.float32)
    out2 = all_head_prelu_layernorm_4dc(x2, gamma, beta, alpha, H, E, eps=eps,
                                        block_bytes=4 * 1024)
    out2 = jax.block_until_ready(out2)
    ref2 = _reference(x2, gamma, beta, alpha, H, E, eps)
    np.testing.assert_allclose(np.asarray(out2), np.asarray(ref2),
                               atol=1e-5, rtol=1e-5)

    print("KERNEL_OK")
</pallas_src>

<mosaic_0001>
module attributes {stable_mosaic.version = 11 : i64} {
  func.func @_prelu_ln_kernel(%arg0: i32, %arg1: i32, %arg2: memref<8x1xf32, #tpu.memory_space<vmem>>, %arg3: memref<8x1xf32, #tpu.memory_space<vmem>>, %arg4: memref<8x1xf32, #tpu.memory_space<vmem>>, %arg5: memref<1x8x256xf32, #tpu.memory_space<vmem>>, %arg6: memref<1x8x256xf32, #tpu.memory_space<vmem>>) attributes {dimension_semantics = [#tpu.dimension_semantics<parallel>, #tpu.dimension_semantics<parallel>], iteration_bounds = array<i64: 2, 1>, scalar_prefetch = 0 : i64, scratch_operands = 0 : i64, tpu.core_type = #tpu.core_type<tc>, window_params = [{pipeline_mode = #tpu.pipeline_mode<synchronous>, transform_indices = @transform_0, window_bounds = array<i64: 8, 1>}, {pipeline_mode = #tpu.pipeline_mode<synchronous>, transform_indices = @transform_1, window_bounds = array<i64: 8, 1>}, {pipeline_mode = #tpu.pipeline_mode<synchronous>, transform_indices = @transform_2, window_bounds = array<i64: 8, 1>}, {transform_indices = @transform_3, window_bounds = array<i64: 1, 8, 256>}, {transform_indices = @transform_4, window_bounds = array<i64: 1, 8, 256>}]} {
    %c0 = arith.constant 0 : index
    %c0_0 = arith.constant 0 : index
    %c0_1 = arith.constant 0 : index
    %0 = vector.load %arg5[%c0, %c0_0, %c0_1] : memref<1x8x256xf32, #tpu.memory_space<vmem>>, vector<1x4x256xf32>
    %1 = vector.shape_cast %0 : vector<1x4x256xf32> to vector<4x256xf32>
    %c0_2 = arith.constant 0 : index
    %c0_3 = arith.constant 0 : index
    %2 = vector.load %arg2[%c0_2, %c0_3] : memref<8x1xf32, #tpu.memory_space<vmem>>, vector<4x1xf32>
    %cst = arith.constant 0.000000e+00 : f32
    %3 = vector.broadcast %cst : f32 to vector<4x256xf32>
    %4 = arith.cmpf oge, %1, %3 : vector<4x256xf32>
    %5 = vector.broadcast %2 : vector<4x1xf32> to vector<4x256xf32>
    %6 = arith.mulf %5, %1 : vector<4x256xf32>
    %7 = arith.select %4, %1, %6 : vector<4x256xi1>, vector<4x256xf32>
    %cst_4 = arith.constant dense<0.000000e+00> : vector<256xf32>
    %8 = vector.multi_reduction <add>, %7, %cst_4 [0] : vector<4x256xf32> to vector<256xf32>
    %9 = vector.shape_cast %8 : vector<256xf32> to vector<1x256xf32>
    %cst_5 = arith.constant 2.500000e-01 : f32
    %10 = vector.broadcast %cst_5 : f32 to vector<1x256xf32>
    %11 = arith.mulf %9, %10 : vector<1x256xf32>
    %12 = vector.broadcast %11 : vector<1x256xf32> to vector<4x256xf32>
    %13 = arith.subf %7, %12 : vector<4x256xf32>
    %14 = arith.mulf %13, %13 : vector<4x256xf32>
    %cst_6 = arith.constant dense<0.000000e+00> : vector<256xf32>
    %15 = vector.multi_reduction <add>, %14, %cst_6 [0] : vector<4x256xf32> to vector<256xf32>
    %16 = vector.shape_cast %15 : vector<256xf32> to vector<1x256xf32>
    %cst_7 = arith.constant 2.500000e-01 : f32
    %17 = vector.broadcast %cst_7 : f32 to vector<1x256xf32>
    %18 = arith.mulf %16, %17 : vector<1x256xf32>
    %cst_8 = arith.constant 9.99999974E-6 : f32
    %19 = vector.broadcast %cst_8 : f32 to vector<1x256xf32>
    %20 = arith.addf %18, %19 : vector<1x256xf32>
    %21 = math.rsqrt %20 : vector<1x256xf32>
    %c0_9 = arith.constant 0 : index
    %c0_10 = arith.constant 0 : index
    %22 = vector.load %arg3[%c0_9, %c0_10] : memref<8x1xf32, #tpu.memory_space<vmem>>, vector<4x1xf32>
    %c0_11 = arith.constant 0 : index
    %c0_12 = arith.constant 0 : index
    %23 = vector.load %arg4[%c0_11, %c0_12] : memref<8x1xf32, #tpu.memory_space<vmem>>, vector<4x1xf32>
    %24 = vector.broadcast %21 : vector<1x256xf32> to vector<4x256xf32>
    %25 = arith.mulf %13, %24 : vector<4x256xf32>
    %26 = vector.broadcast %22 : vector<4x1xf32> to vector<4x256xf32>
    %27 = arith.mulf %25, %26 : vector<4x256xf32>
    %28 = vector.broadcast %23 : vector<4x1xf32> to vector<4x256xf32>
    %29 = arith.addf %27, %28 : vector<4x256xf32>
    %c0_13 = arith.constant 0 : index
    %c0_14 = arith.constant 0 : index
    %c0_15 = arith.constant 0 : index
    %30 = vector.load %arg6[%c0_13, %c0_14, %c0_15] : memref<1x8x256xf32, #tpu.memory_space<vmem>>, vector<1x4x256xf32>
    %31 = vector.shape_cast %30 : vector<1x4x256xf32> to vector<4x256xf32>
    %32 = vector.shape_cast %29 : vector<4x256xf32> to vector<1x4x256xf32>
    tpu.vector_store %arg6[%c0_13, %c0_14, %c0_15], %32 {strides = array<i32>} : memref<1x8x256xf32, #tpu.memory_space<vmem>>, vector<1x4x256xf32>,
    %c0_16 = arith.constant 0 : index
    %c4 = arith.constant 4 : index
    %c0_17 = arith.constant 0 : index
    %33 = vector.load %arg5[%c0_16, %c4, %c0_17] : memref<1x8x256xf32, #tpu.memory_space<vmem>>, vector<1x4x256xf32>
    %34 = vector.shape_cast %33 : vector<1x4x256xf32> to vector<4x256xf32>
    %c4_18 = arith.constant 4 : index
    %c0_19 = arith.constant 0 : index
    %35 = vector.load %arg2[%c4_18, %c0_19] : memref<8x1xf32, #tpu.memory_space<vmem>>, vector<4x1xf32>
    %cst_20 = arith.constant 0.000000e+00 : f32
    %36 = vector.broadcast %cst_20 : f32 to vector<4x256xf32>
    %37 = arith.cmpf oge, %34, %36 : vector<4x256xf32>
    %38 = vector.broadcast %35 : vector<4x1xf32> to vector<4x256xf32>
    %39 = arith.mulf %38, %34 : vector<4x256xf32>
    %40 = arith.select %37, %34, %39 : vector<4x256xi1>, vector<4x256xf32>
    %cst_21 = arith.constant dense<0.000000e+00> : vector<256xf32>
    %41 = vector.multi_reduction <add>, %40, %cst_21 [0] : vector<4x256xf32> to vector<256xf32>
    %42 = vector.shape_cast %41 : vector<256xf32> to vector<1x256xf32>
    %cst_22 = arith.constant 2.500000e-01 : f32
    %43 = vector.broadcast %cst_22 : f32 to vector<1x256xf32>
    %44 = arith.mulf %42, %43 : vector<1x256xf32>
    %45 = vector.broadcast %44 : vector<1x256xf32> to vector<4x256xf32>
    %46 = arith.subf %40, %45 : vector<4x256xf32>
    %47 = arith.mulf %46, %46 : vector<4x256xf32>
    %cst_23 = arith.constant dense<0.000000e+00> : vector<256xf32>
    %48 = vector.multi_reduction <add>, %47, %cst_23 [0] : vector<4x256xf32> to vector<256xf32>
    %49 = vector.shape_cast %48 : vector<256xf32> to vector<1x256xf32>
    %cst_24 = arith.constant 2.500000e-01 : f32
    %50 = vector.broadcast %cst_24 : f32 to vector<1x256xf32>
    %51 = arith.mulf %49, %50 : vector<1x256xf32>
    %cst_25 = arith.constant 9.99999974E-6 : f32
    %52 = vector.broadcast %cst_25 : f32 to vector<1x256xf32>
    %53 = arith.addf %51, %52 : vector<1x256xf32>
    %54 = math.rsqrt %53 : vector<1x256xf32>
    %c4_26 = arith.constant 4 : index
    %c0_27 = arith.constant 0 : index
    %55 = vector.load %arg3[%c4_26, %c0_27] : memref<8x1xf32, #tpu.memory_space<vmem>>, vector<4x1xf32>
    %c4_28 = arith.constant 4 : index
    %c0_29 = arith.constant 0 : index
    %56 = vector.load %arg4[%c4_28, %c0_29] : memref<8x1xf32, #tpu.memory_space<vmem>>, vector<4x1xf32>
    %57 = vector.broadcast %54 : vector<1x256xf32> to vector<4x256xf32>
    %58 = arith.mulf %46, %57 : vector<4x256xf32>
    %59 = vector.broadcast %55 : vector<4x1xf32> to vector<4x256xf32>
    %60 = arith.mulf %58, %59 : vector<4x256xf32>
    %61 = vector.broadcast %56 : vector<4x1xf32> to vector<4x256xf32>
    %62 = arith.addf %60, %61 : vector<4x256xf32>
    %c0_30 = arith.constant 0 : index
    %c4_31 = arith.constant 4 : index
    %c0_32 = arith.constant 0 : index
    %63 = vector.load %arg6[%c0_30, %c4_31, %c0_32] : memref<1x8x256xf32, #tpu.memory_space<vmem>>, vector<1x4x256xf32>
    %64 = vector.shape_cast %63 : vector<1x4x256xf32> to vector<4x256xf32>
    %65 = vector.shape_cast %62 : vector<4x256xf32> to vector<1x4x256xf32>
    tpu.vector_store %arg6[%c0_30, %c4_31, %c0_32], %65 {strides = array<i32>} : memref<1x8x256xf32, #tpu.memory_space<vmem>>, vector<1x4x256xf32>,
    return
  }
  func.func @transform_0(%arg0: i32, %arg1: i32) -> (i32, i32) {
    %c0_i32 = arith.constant 0 : i32
    %c0_i32_0 = arith.constant 0 : i32
    %c0_i32_1 = arith.constant 0 : i32
    return %c0_i32, %c0_i32_0 : i32, i32
  }
  func.func @transform_1(%arg0: i32, %arg1: i32) -> (i32, i32) {
    %c0_i32 = arith.constant 0 : i32
    %c0_i32_0 = arith.constant 0 : i32
    %c0_i32_1 = arith.constant 0 : i32
    return %c0_i32, %c0_i32_0 : i32, i32
  }
  func.func @transform_2(%arg0: i32, %arg1: i32) -> (i32, i32) {
    %c0_i32 = arith.constant 0 : i32
    %c0_i32_0 = arith.constant 0 : i32
    %c0_i32_1 = arith.constant 0 : i32
    return %c0_i32, %c0_i32_0 : i32, i32
  }
  func.func @transform_3(%arg0: i32, %arg1: i32) -> (i32, i32, i32) {
    %c0_i32 = arith.constant 0 : i32
    %c0_i32_0 = arith.constant 0 : i32
    return %arg0, %c0_i32, %arg1 : i32, i32, i32
  }
  func.func @transform_4(%arg0: i32, %arg1: i32) -> (i32, i32, i32) {
    %c0_i32 = arith.constant 0 : i32
    %c0_i32_0 = arith.constant 0 : i32
    return %arg0, %c0_i32, %arg1 : i32, i32, i32
  }
}

</mosaic_0001>

<bundles_post_ra>
// kernel: tpu_custom_call.1
= control target key start
LH: loop header
LB: loop body
LE: loop exit
PB: predicated region body
PF: predicated region fallthrough
CT: control target
= control target key end

     0   :  { %9 = vsyncpa [#allocation3], 0  ;;  %s957_s0 = inlined_call_operand.vmem [shape: f32[8,1], index: 0, kind: input, shape index: {}]   ;;  %s958_s1 = inlined_call_operand.vmem [shape: f32[8,1], index: 1, kind: input, shape index: {}]   ;;  %s959_s2 = inlined_call_operand.vmem [shape: f32[8,1], index: 2, kind: input, shape index: {}]   ;;  %s960_s3 = inlined_call_operand.hbm [shape: f32[2,8,256], index: 3, kind: input, shape index: {}]   ;;  %s961_s4 = inlined_call_operand.hbm [shape: f32[2,8,256], index: 4, kind: output, shape index: {}]  }
   0x1   :  { %11 = vsyncpa [#allocation3 + $0x1], 0 }
   0x2   :  { %12 = vsyncpa [#allocation4], 0 }
   0x3   :  { %14 = vsyncpa [#allocation4 + $0x1], 0  ;;  %s781_s15 = smov 0   ;;  %s783_s16 = smov 0  }
   0x4   :  { %s785_s17 = smov 0   ;;  %s787_s18 = smov 0  }
   0x5   :  { %s789_s19 = smov 0   ;;  %s791_s20 = smov 0  }
   0x6 LB: > { %s550_s21 = sadd.s32 4294967295, %s753_s20   ;;  %s551_s22 = sadd.s32 4294967294, %s753_s20   ;;  %s753_s20 = sphi %s791_s20, %s20_s20   ;;  %s749_s19 = sphi %s789_s19, %s970_s19   ;;  %s745_s18 = sphi %s787_s18, %s969_s18   ;;  %s741_s17 = sphi %s785_s17, %s968_s17   ;;  %s737_s16 = sphi %s783_s16, %s967_s16   ;;  %s733_s15 = sphi %s781_s15, %s966_s15  }
   0x7   : > { %s32_s23 = sadd.s32 1, %s749_s19  ;;  %s104_s24 = sadd.s32 1, %s741_s17 }
   0x8   : > { %p34_p0 = scmp.ge.s32.totalorder %s32_s23, 2  ;;  %p111_p1 = scmp.ne.s32.totalorder %s741_s17, %s737_s16 }
   0x9   : > { %p112_p2 = scmp.eq.s32.totalorder %s753_s20, 0  ;;  %p117_p3 = scmp.ne.s32.totalorder %s737_s16, %s733_s15 }
   0xa   : > { %s972_s23 = smov (%p34_p0, %s32_s23), 0  ;;  %p118_p5 = scmp.eq.s32.totalorder %s550_s21, 0 }
   0xb   : > { %p822_p4 = por %p112_p2, %p111_p1  ;;  %s99_s26 = ssub.s32 %s749_s19, %s972_s23 }
   0xc   : > { %p143_p6 = scmp.eq.s32.totalorder %s550_s21, 1  ;;  %p102_p7 = scmp.eq.s32.totalorder %s99_s26, 0 }
   0xd   : > { %p828_p8 = por %p118_p5, %p117_p3  ;;  %p149_p10 = scmp.eq.s32.totalorder %s551_s22, 1 }
   0xe   : > { %p832_p9 = por %p143_p6, %p111_p1  ;;  %p553_p12 = scmp.ge.s32.totalorder %s753_s20, 2 }
   0xf   : > { %s837_s29 = scalar_select %p102_p7, %s741_s17, %s104_s24  }
  0x10   : > { %p839_p11 = por %p149_p10, %p117_p3  ;;  %p579_p13 = scmp.lt.s32.totalorder %s753_s20, 2 }
  0x11   : > { %s178_s5 = sand.u32 1, %s741_s17   ;;  %s565_s7 = sshll.u32 %s749_s19, 4 }
  0x12   : > { %s554_s6 = sshll.u32 %s178_s5, 4  ;;  %s189_s10 = scalar_lea.hbm %s960_s3, %s565_s7 }
  0x13   : > { %s182_s11 = scalar_lea.vmem [#allocation2], %s554_s6  ;;  %s191_s13 = sshll.u32 %s189_s10, 4  ;;  %s192_s13 = int_to_ptr.hbm [resolvable:$true] %s191_s13 }
  0x14   : > { %s193_s12 = sshll.u32 %s182_s11, 4  ;;  %p572_p0 = pnand %p579_p13, %p822_p4  ;;  %s194_s12 = int_to_ptr.vmem [resolvable:$true] %s193_s12 }
  0x15   : > { %p557_p1 = scmp.ge.s32.totalorder %s753_s20, 1  ;;  %p198_p2 = scmp.lt.s32.totalorder %s753_s20, 3 }
  0x16   : > { %s179_s14 = scalar_lea.sflag [#allocation3], %s178_s5 }
  0x17   : > { %574 = dma.hbm_to_vmem [thread:$0]  (!%p572_p0), %s192_s13, 256, %s194_s12, %s179_s14  }
  0x18   : > { %p199_p3 = pnand %p557_p1, %p198_p2 }
  0x19   : > { %s855_s21 = sand.u32 (!%p199_p3), 1, %s737_s16  }
  0x1a   : > { %202 = sbr.rel (%p199_p3) target bundleno = 224 (0xe0), region = 36  ;;  %s558_s22 = sshll.u32 (!%p199_p3), %s855_s21, 4 }
  0x1b   : > { %s205_s24 = scalar_lea.sflag (!%p199_p3), [#allocation3], %s855_s21  ;;  %s861_s26 = scalar_lea.vmem (!%p199_p3), [#allocation2], %s558_s22 }
  0x1f   : > { %724 = dma.done.wait (%p828_p8), %s205_s24, 256  }
  0x20   : > { %726 = vsyncadd (%p828_p8), %s205_s24, 4294967040  ;;  %v755_v0 = vmov 0   ;;  %v331_v1 = vld [vmem:[%s957_s0 + $0x4] sm:$0xf]  ;;  %v238_v4 = vld [vmem:[%s957_s0] sm:$0xf] }
  0x21   : > { %630 = vset.pattern.permute.xlu0 %v755_v0  ;;  %631 = vset.pattern.permute.xlu1 %v755_v0  ;;  %v425_v2 = vld [vmem:[%s958_s1 + $0x4] sm:$0xf]  ;;  %v309_v5 = vld [vmem:[%s958_s1] sm:$0xf]  ;;  %v330_v8 = vld [vmem:[%s861_s26 + $0x8] sm:$0xf0] }
  0x22   : > { %632 = vset.pattern.permute.xlu2 %v755_v0  ;;  %336 = vperm.xlu0 %630, %v331_v1   ;;  %v426_v3 = vld [vmem:[%s959_s2 + $0x4] sm:$0xf]  ;;  %v310_v6 = vld [vmem:[%s959_s2] sm:$0xf]  ;;  %v342_v10 = vrot.slane %v330_v8, 4  ;;  %vm333_vm1 = vcmp.ge.f32.partialorder %v330_v8, 0.0 }
  0x23   : > { %431 = vperm.xlu1 %631, %v425_v2   ;;  %439 = vperm.xlu2 %632, %v426_v3   ;;  %v329_v7 = vld [vmem:[%s861_s26] sm:$0xf0]  ;;  %vm250_vm2 = vcmask 1043456   ;;  %v236_v18 = vld [vmem:[%s861_s26] sm:$0xf]  ;;  %s566_s24 = sshll.u32 %s745_s18, 4 }
  0x24   : > { %v341_v9 = vrot.slane %v329_v7, 4  ;;  %vm332_vm0 = vcmp.ge.f32.partialorder %v329_v7, 0.0  ;;  %v237_v19 = vld [vmem:[%s861_s26 + $0x8] sm:$0xf]  ;;  %vm239_vm3 = vcmp.ge.f32.partialorder %v236_v18, 0.0  ;;  %s461_s18 = scalar_lea.hbm %s961_s4, %s566_s24  ;;  %s233_s5 = scalar_lea.vmem [#allocation5], %s558_s22 }
  0x25   : > { %vm240_vm4 = vcmp.ge.f32.partialorder %v237_v19, 0.0  ;;  %s463_s6 = sshll.u32 %s233_s5, 4  ;;  %s465_s7 = sshll.u32 %s461_s18, 4  ;;  %s464_s6 = int_to_ptr.vmem [resolvable:$true] %s463_s6  ;;  %s466_s7 = int_to_ptr.hbm [resolvable:$true] %s465_s7 }
  0x26   : > { %s448_s8 = scalar_lea.sflag [#allocation4], %s855_s21  ;;  %s685_s9 = sshra.s32 %s466_s7, 4  ;;  %s686_s9 = int_to_ptr.hbm [resolvable:$true] %s685_s9 }
  0x27   : > { %s687_s27 = scalar_lea.hbm %s686_s9, 16  ;;  %s691_s11 = scalar_lea.hbm %s961_s4, 32 }
  0x28   : > { %p688_p4 = scmp.ne.s32.totalorder %s686_s9, %s687_s27  ;;  %p692_p7 = scmp.lt.s32.totalorder %s686_s9, %s961_s4 }
  0x29   : > { %p693_p8 = scmp.lt.s32.totalorder %s691_s11, %s687_s27 }
  0x2a   : > { %243 = vperm.xlu0 %630, %v238_v4   ;;  %p689_p5 = pnand %p688_p4, %p832_p9 }
  0x2b   : > { %315 = vperm.xlu1 %631, %v309_v5   ;;  %322 = vperm.xlu2 %632, %v310_v6   ;;  %p694_p10 = por %p693_p8, %p692_p7 }
  0x2c   : > { %p690_p6 = pneg %p689_p5 }
  0x2e   : > { %p695_p13 = pnand %p694_p10, %p690_p6 }
  0x94   : > { %v337_v11 = vpop.permute.xlu0 %336 }
  0x95   : > { %v345_v12 = vmul.f32 %v341_v9, %v337_v11  ;;  %v346_v13 = vmul.f32 %v342_v10, %v337_v11 }
  0x97   : > { %v349_v14 = vrot.slane %v345_v12, 4  ;;  %v350_v15 = vrot.slane %v346_v13, 4 }
  0x99   : > { %v353_v16 = vsel %vm332_vm0, %v329_v7, %v349_v14  ;;  %v354_v17 = vsel %vm333_vm1, %v330_v8, %v350_v15 }
  0x9a   : > { %v357_v20 = vrot.slane %v353_v16, 4  ;;  %v358_v21 = vrot.slane %v354_v17, 4 }
  0x9c   : > { %v361_v22 = vsel %vm250_vm2, %v357_v20, 0.0  ;;  %v368_v23 = vsel %vm250_vm2, %v358_v21, 0.0  ;;  %v244_v24 = vpop.permute.xlu0 %243 }
  0x9d   : > { %v362_v25 = vrot.slane %v361_v22, 4  ;;  %v369_v26 = vrot.slane %v368_v23, 4  ;;  %v246_v27 = vmul.f32 %v244_v24, %v236_v18  ;;  %v247_v28 = vmul.f32 %v244_v24, %v237_v19 }
  0x9f   : > { %v363_v29 = vadd.f32 %v362_v25, %v361_v22  ;;  %v370_v30 = vadd.f32 %v369_v26, %v368_v23  ;;  %v248_v31 = vsel %vm239_vm3, %v236_v18, %v246_v27  ;;  %v249_v32 = vsel %vm240_vm4, %v237_v19, %v247_v28 }
  0xa0   : > { %v251_v33 = vsel %vm250_vm2, %v248_v31, 0.0  ;;  %v258_v34 = vsel %vm250_vm2, %v249_v32, 0.0 }
  0xa1   : > { %v364_v35 = vrot.slane %v363_v29, 2  ;;  %v371_v36 = vrot.slane %v370_v30, 2  ;;  %v252_v37 = vrot.slane %v251_v33, 4  ;;  %v259_v38 = vrot.slane %v258_v34, 4 }
  0xa3   : > { %v253_v39 = vadd.f32 %v252_v37, %v251_v33  ;;  %v260_v40 = vadd.f32 %v259_v38, %v258_v34  ;;  %v365_v41 = vadd.f32 %v364_v35, %v363_v29  ;;  %v372_v42 = vadd.f32 %v371_v36, %v370_v30 }
  0xa5   : > { %v254_v43 = vrot.slane %v253_v39, 2  ;;  %v261_v44 = vrot.slane %v260_v40, 2  ;;  %v366_v45 = vrot.slane %v365_v41, 1  ;;  %v373_v46 = vrot.slane %v372_v42, 1 }
  0xa7   : > { %v367_v47 = vadd.f32 %v366_v45, %v365_v41  ;;  %v374_v48 = vadd.f32 %v373_v46, %v372_v42  ;;  %v255_v49 = vadd.f32 %v254_v43, %v253_v39  ;;  %v262_v50 = vadd.f32 %v261_v44, %v260_v40 }
  0xa9   : > { %v375_v51 = vmul.f32 0.25, %v367_v47  ;;  %v376_v52 = vmul.f32 0.25, %v374_v48  ;;  %v256_v53 = vrot.slane %v255_v49, 1  ;;  %v263_v54 = vrot.slane %v262_v50, 1 }
  0xab   : > { %v893_v55 = vsub.f32 %v353_v16, %v375_v51  ;;  %v895_v56 = vsub.f32 %v354_v17, %v376_v52  ;;  %v257_v57 = vadd.f32 %v256_v53, %v255_v49  ;;  %v264_v58 = vadd.f32 %v263_v54, %v262_v50  ;;  %v432_v51 = vpop.permute.xlu1 %431 }
  0xad   : > { %v379_v59 = vmul.f32 %v893_v55, %v893_v55  ;;  %v380_v60 = vmul.f32 %v895_v56, %v895_v56  ;;  %v265_v61 = vmul.f32 0.25, %v257_v57  ;;  %v266_v62 = vmul.f32 0.25, %v264_v58 }
  0xaf   : > { %v383_v63 = vrot.slane %v379_v59, 4  ;;  %v384_v0 = vrot.slane %v380_v60, 4  ;;  %v901_v1 = vsub.f32 %v248_v31, %v265_v61  ;;  %v903_v2 = vsub.f32 %v249_v32, %v266_v62  ;;  %v440_v59 = vpop.permute.xlu2 %439 }
  0xb1   : > { %v387_v3 = vsel %vm250_vm2, %v383_v63, 0.0  ;;  %v394_v4 = vsel %vm250_vm2, %v384_v0, 0.0  ;;  %v269_v5 = vmul.f32 %v901_v1, %v901_v1  ;;  %v270_v8 = vmul.f32 %v903_v2, %v903_v2 }
  0xb2   : > { %v388_v6 = vrot.slane %v387_v3, 4  ;;  %v395_v7 = vrot.slane %v394_v4, 4 }
  0xb3   : > { %v271_v9 = vsel %vm250_vm2, %v269_v5, 0.0  ;;  %v278_v13 = vsel %vm250_vm2, %v270_v8, 0.0 }
  0xb4   : > { %v389_v10 = vadd.f32 %v388_v6, %v387_v3  ;;  %v396_v11 = vadd.f32 %v395_v7, %v394_v4  ;;  %v272_v12 = vrot.slane %v271_v9, 4  ;;  %v279_v14 = vrot.slane %v278_v13, 4 }
  0xb5   : > { %v433_v6 = vrot.slane %v432_v51, 4 }
  0xb6   : > { %v390_v15 = vrot.slane %v389_v10, 2  ;;  %v397_v16 = vrot.slane %v396_v11, 2  ;;  %v273_v17 = vadd.f32 %v272_v12, %v271_v9  ;;  %v280_v18 = vadd.f32 %v279_v14, %v278_v13 }
  0xb7   : > { %v441_v14 = vrot.slane %v440_v59, 4 }
  0xb8   : > { %v391_v19 = vadd.f32 %v390_v15, %v389_v10  ;;  %v398_v20 = vadd.f32 %v397_v16, %v396_v11  ;;  %v274_v21 = vrot.slane %v273_v17, 2  ;;  %v281_v22 = vrot.slane %v280_v18, 2 }
  0xba   : > { %v392_v23 = vrot.slane %v391_v19, 1  ;;  %v399_v24 = vrot.slane %v398_v20, 1  ;;  %v275_v25 = vadd.f32 %v274_v21, %v273_v17  ;;  %v282_v26 = vadd.f32 %v281_v22, %v280_v18  ;;  %v316_v18 = vpop.permute.xlu1 %315  ;;  %v323_v22 = vpop.permute.xlu2 %322 }
  0xbc   : > { %v393_v27 = vadd.f32 %v392_v23, %v391_v19  ;;  %v400_v28 = vadd.f32 %v399_v24, %v398_v20  ;;  %v276_v29 = vrot.slane %v275_v25, 1  ;;  %v283_v30 = vrot.slane %v282_v26, 1 }
  0xbe   : > { %v401_v31 = vmul.f32 0.25, %v393_v27  ;;  %v402_v32 = vmul.f32 0.25, %v400_v28  ;;  %v277_v33 = vadd.f32 %v276_v29, %v275_v25  ;;  %v284_v34 = vadd.f32 %v283_v30, %v282_v26 }
  0xc0   : > { %v403_v35 = vadd.f32 1e-05, %v401_v31  ;;  %v404_v36 = vadd.f32 1e-05, %v402_v32  ;;  %v285_v37 = vmul.f32 0.25, %v277_v33  ;;  %v286_v38 = vmul.f32 0.25, %v284_v34 }
  0xc2   : > { %633 = vrsqrt.f32 %v403_v35  ;;  %v287_v39 = vadd.f32 1e-05, %v285_v37  ;;  %v288_v40 = vadd.f32 1e-05, %v286_v38  ;;  %vm411_vm7 = vweird.f32 %v403_v35 }
  0xc3   : > { %635 = vrsqrt.f32 %v404_v36  ;;  %vm421_vm10 = vweird.f32 %v404_v36 }
  0xc4   : > { %637 = vrsqrt.f32 %v287_v39  ;;  %vm295_vm13 = vweird.f32 %v287_v39  ;;  %vm305_vm15 = vweird.f32 %v288_v40 }
  0xc5   : > { %639 = vrsqrt.f32 %v288_v40 }
  0xc8   : > { %v634_v41 = vpop.eup %633 }
  0xc9   : > { %v636_v42 = vpop.eup %635  ;;  %v406_v43 = vmul.f32 %v634_v41, %v403_v35  ;;  %vm412_vm5 = vweird.f32 %v634_v41 }
  0xca   : > { %v638_v44 = vpop.eup %637  ;;  %v416_v45 = vmul.f32 %v636_v42, %v404_v36  ;;  %vm422_vm6 = vweird.f32 %v636_v42  ;;  %vm413_vm9 = vmor %vm411_vm7, %vm412_vm5 }
  0xcb   : > { %v640_v46 = vpop.eup %639  ;;  %v407_v47 = vmul.f32 %v634_v41, %v406_v43  ;;  %v290_v48 = vmul.f32 %v638_v44, %v287_v39  ;;  %vm296_vm8 = vweird.f32 %v638_v44  ;;  %vm423_vm12 = vmor %vm421_vm10, %vm422_vm6 }
  0xcc   : > { %v417_v49 = vmul.f32 %v636_v42, %v416_v45  ;;  %v300_v50 = vmul.f32 %v640_v46, %v288_v40  ;;  %vm306_vm11 = vweird.f32 %v640_v46  ;;  %vm297_vm14 = vmor %vm295_vm13, %vm296_vm8 }
  0xcd   : > { %v408_v52 = vmul.f32 0.5, %v407_v47  ;;  %v291_v53 = vmul.f32 %v638_v44, %v290_v48  ;;  %vm307_vm0 = vmor %vm305_vm15, %vm306_vm11 }
  0xce   : > { %v418_v54 = vmul.f32 0.5, %v417_v49  ;;  %v301_v57 = vmul.f32 %v640_v46, %v300_v50 }
  0xcf   : > { %v409_v58 = vsub.f32 1.5, %v408_v52  ;;  %v292_v60 = vmul.f32 0.5, %v291_v53 }
  0xd0   : > { %v419_v61 = vsub.f32 1.5, %v418_v54  ;;  %v302_v62 = vmul.f32 0.5, %v301_v57 }
  0xd1   : > { %v410_v63 = vmul.f32 %v634_v41, %v409_v58  ;;  %v293_v0 = vsub.f32 1.5, %v292_v60 }
  0xd2   : > { %v420_v3 = vmul.f32 %v636_v42, %v419_v61  ;;  %v303_v4 = vsub.f32 1.5, %v302_v62 }
  0xd3   : > { %v414_v5 = vsel %vm413_vm9, %v634_v41, %v410_v63  ;;  %v294_v7 = vmul.f32 %v638_v44, %v293_v0 }
  0xd4   : > { %v424_v8 = vsel %vm423_vm12, %v636_v42, %v420_v3  ;;  %v427_v9 = vmul.f32 %v414_v5, %v893_v55  ;;  %v304_v10 = vmul.f32 %v640_v46, %v303_v4 }
  0xd5   : > { %v428_v11 = vmul.f32 %v424_v8, %v895_v56  ;;  %v298_v12 = vsel %vm297_vm14, %v638_v44, %v294_v7 }
  0xd6   : > { %v435_v13 = vmul.f32 %v433_v6, %v427_v9  ;;  %v308_v15 = vsel %vm307_vm0, %v640_v46, %v304_v10  ;;  %v311_v16 = vmul.f32 %v298_v12, %v901_v1 }
  0xd7   : > { %v436_v17 = vmul.f32 %v433_v6, %v428_v11  ;;  %v312_v55 = vmul.f32 %v308_v15, %v903_v2 }
  0xd8   : > { %v443_v19 = vadd.f32 %v441_v14, %v435_v13  ;;  %v318_v20 = vmul.f32 %v316_v18, %v311_v16 }
  0xd9   : > { %v444_v56 = vadd.f32 %v441_v14, %v436_v17  ;;  %v319_v21 = vmul.f32 %v316_v18, %v312_v55 }
  0xda   : > { %445 = vst [vmem:[%s233_s5] sm:$0xf0] %v443_v19  ;;  %v325_v23 = vadd.f32 %v323_v22, %v318_v20 }
  0xdb   : > { %446 = vst [vmem:[%s233_s5 + $0x8] sm:$0xf0] %v444_v56  ;;  %v326_v24 = vadd.f32 %v323_v22, %v319_v21 }
  0xdc   : > { %327 = vst [vmem:[%s233_s5] sm:$0xf] %v325_v23 }
  0xdd   : > { %328 = vst [vmem:[%s233_s5 + $0x8] sm:$0xf] %v326_v24 }
  0xde   : > { %698 = shalt.err (!%p695_p13)
}
  0xdf   : > { %569 = dma.vmem_to_hbm [thread:$0]  (%p832_p9), %s464_s6, 256, %s466_s7, %s448_s8  }
  0xe0 PF: > { %s477_s21 = sand.u32 1, %s733_s15   ;;  %p576_p0 = pnand %p553_p12, %p839_p11 }
  0xe1   : > { %s478_s14 = scalar_lea.sflag [#allocation4], %s477_s21 }
  0xe2   : > { %p577_p1 = pneg %p576_p0 }
  0xe4   : > { %728 = dma.done.wait (%p577_p1), %s478_s14, 256  }
  0xe5   : > { %730 = vsyncadd (%p577_p1), %s478_s14, 4294967040  ;;  %s20_s20 = sadd.s32 1, %s753_s20   ;;  %s966_s15 = smov %s737_s16 }
  0xe6   : > { %p17_p2 = scmp.ge.s32.totalorder %s20_s20, 4   ;;  %s967_s16 = smov %s741_s17 }
  0xe7   : > { %s968_s17 = smov %s837_s29  ;;  %s969_s18 = smov %s749_s19 }
  0xe8   : > { %s970_s19 = smov %s972_s23  ;;  %19 = sbr.rel (!%p17_p2) target bundleno = 6 (0x6), region = 81 }
  0xed   :  { %484 = vsyncpa [#allocation3], 1 }
  0xee   :  { %486 = vsyncpa [#allocation3 + $0x1], 1 }
  0xef   :  { %487 = vsyncpa [#allocation4], 1 }
  0xf0   :  { %489 = vsyncpa [#allocation4 + $0x1], 1 }

</bundles_post_ra>
